<compile_context>
chip_gen: v5e
topology: v5e:2x2
jax: 0.10.0
libtpu: 0.0.40
codegen_flags: <defaults>
</compile_context>

<pallas_src>
import functools

import jax
import jax.numpy as jnp
import numpy as np
from jax import lax
from jax.experimental import pallas as pl
from jax.experimental.pallas import tpu as pltpu

_SEC = 8                       # sublane height of each packed section
_OFF_CLS_X = 0 * _SEC          # cls logits        (pad rows/cols = -1e9)
_OFF_CLS_T = 1 * _SEC          # cls soft targets  (pad = 0)
_OFF_REGS = 2 * _SEC           # reg predictions   (pad = 0)
_OFF_STCLS = 3 * _SEC          # stcls logits      (pad rows/cols = -1e9)
_OFF_TREGS = 4 * _SEC          # reg targets       (pad = -10000 -> background)
_OFF_TSTCLS = 5 * _SEC         # stcls targets     (pad = 0)
_PACKED_ROWS = 6 * _SEC        # 48


def _round_up(x, m):
    return (x + m - 1) // m * m


# ----------------------------------------------------------------------------
# Fused kernel: one lane-tile of N rows -> partial sums of all losses.
# Input is a single (48, TILE_N) lane-dense block; output is a resident SMEM
# (1, 5) accumulator: [cls_sum, stcls_sum, l1_sum, diou_sum, fg_count].
# ----------------------------------------------------------------------------
def _fused_loss_kernel(packed_ref, out_ref, *, reg_dim, segment_size, eps):
    step = pl.program_id(0)

    @pl.when(step == 0)
    def _init():
        for j in range(5):
            out_ref[0, j] = 0.0

    # ---- unpack sections (all slices are full (8,128)-tile aligned) --------
    x = packed_ref[_OFF_CLS_X:_OFF_CLS_X + _SEC, :]        # (8, T) cls logits
    t = packed_ref[_OFF_CLS_T:_OFF_CLS_T + _SEC, :]        # (8, T) cls targets
    regs = packed_ref[_OFF_REGS:_OFF_REGS + _SEC, :]       # (8, T) reg preds
    xs = packed_ref[_OFF_STCLS:_OFF_STCLS + _SEC, :]       # (8, T) stcls logits
    tregs = packed_ref[_OFF_TREGS:_OFF_TREGS + _SEC, :]    # (8, T) reg targets
    ts = packed_ref[_OFF_TSTCLS:_OFF_TSTCLS + _SEC, :]     # (8, T) stcls targets

    # ---------------- cls cross-entropy (all rows, soft labels) -------------
    mx = jnp.max(x, axis=0, keepdims=True)
    lse = jnp.log(jnp.sum(jnp.exp(x - mx), axis=0, keepdims=True)) + mx
    cls_sum = jnp.sum(-t * (x - lse))                       # pad cols: t == 0

    # ---------------- foreground mask from reg targets ----------------------
    tgt_st = tregs[0:1, :]
    tgt_ed = tregs[1:2, :]
    fg = (tgt_ed >= -1000.0).astype(jnp.float32)            # (1, T); pads -> 0
    fg_cnt = jnp.sum(fg)

    # ---------------- stcls cross-entropy (fg rows only) --------------------
    mxs = jnp.max(xs, axis=0, keepdims=True)
    lses = jnp.log(jnp.sum(jnp.exp(xs - mxs), axis=0, keepdims=True)) + mxs
    st_per = jnp.sum(-ts * (xs - lses), axis=0, keepdims=True)   # (1, T)
    st_sum = jnp.sum(st_per * fg)

    # ---------------- first-argmax along sublanes (reuses mxs) --------------
    iota8 = lax.broadcasted_iota(jnp.int32, xs.shape, 0)
    src_sel = jnp.min(jnp.where(xs >= mxs, iota8, _SEC), axis=0, keepdims=True)
    mxt = jnp.max(ts, axis=0, keepdims=True)
    tgt_sel = jnp.min(jnp.where(ts >= mxt, iota8, _SEC), axis=0, keepdims=True)

    # ---------------- sel_regoffset (masked-iota select, gather-free) -------
    streg = jnp.sum(regs * (iota8 == src_sel).astype(jnp.float32),
                    axis=0, keepdims=True)                  # (1, T); src_sel < S
    edreg = jnp.sum(regs * (iota8 == (reg_dim - 1)).astype(jnp.float32),
                    axis=0, keepdims=True)                  # (1, T); last reg row

    # ---------------- L1 numerator (fg rows, 2 elems/row) -------------------
    l1_sum = jnp.sum((jnp.abs(streg - tgt_st) + jnp.abs(edreg - tgt_ed)) * fg)

    # ---------------- DIoU numerator -----------------------------------------
    # edrstc2r2offset -> offsets = [(reg0 + sel)*seg, -reg1*seg]
    # ctr_diou_loss_1d(input=[st, -ed]): sp = -st_offset, ep = -ed_offset
    sp = -(streg + src_sel.astype(jnp.float32)) * segment_size
    ep = -edreg * segment_size
    sg = -(tgt_st + tgt_sel.astype(jnp.float32)) * segment_size
    eg = -tgt_ed * segment_size
    intsctk = jnp.minimum(ep, eg) - jnp.maximum(sp, sg)
    unionk = (ep - sp) + (eg - sg) - intsctk
    iouk = intsctk * pl.reciprocal(jnp.maximum(unionk, eps), approx=True)
    len_c = jnp.maximum(ep, eg) - jnp.minimum(sp, sg)
    rho = jnp.abs(0.5 * (ep + sp - eg - sg))
    rr = rho * pl.reciprocal(jnp.maximum(len_c, eps), approx=True)
    diou = 1.0 - iouk + rr * rr
    diou_sum = jnp.sum(diou * fg)

    out_ref[0, 0] += cls_sum
    out_ref[0, 1] += st_sum
    out_ref[0, 2] += l1_sum
    out_ref[0, 3] += diou_sum
    out_ref[0, 4] += fg_cnt


def _fused_losses_sums(cls_x, cls_t, src_regs, src_stcls, tgt_regs, tgt_stcls,
                       *, segment_size, eps=1e-8):
    n = cls_x.shape[0]
    reg_dim = src_regs.shape[-1]
    tile_n = 1024 if n > 1024 else _round_up(max(n, 1), 128)
    n_pad = _round_up(n, tile_n)
    grid = (n_pad // tile_n,)

    def section(a, pad_val):
        a_t = jnp.transpose(a).astype(jnp.float32)          # (F, N) lane-dense
        f = a_t.shape[0]
        return jnp.pad(a_t, ((0, _SEC - f), (0, n_pad - n)),
                       constant_values=pad_val)

    packed = jnp.concatenate([
        section(cls_x, -1e9),        # logit pads keep the LSE untouched
        section(cls_t, 0.0),         # target pads contribute 0
        section(src_regs, 0.0),      # pad rows never selected (masked iota)
        section(src_stcls, -1e9),    # logit pads keep the LSE / argmax untouched
        section(tgt_regs, -10000.0), # pad cols -> background (fg = 0)
        section(tgt_stcls, 0.0),
    ], axis=0)                       # (48, n_pad)

    kern = functools.partial(_fused_loss_kernel, reg_dim=int(reg_dim),
                             segment_size=float(segment_size), eps=float(eps))
    sums = pl.pallas_call(
        kern,
        out_shape=jax.ShapeDtypeStruct((1, 5), jnp.float32),
        grid_spec=pltpu.PrefetchScalarGridSpec(
            num_scalar_prefetch=0,
            grid=grid,
            in_specs=[pl.BlockSpec((_PACKED_ROWS, tile_n), lambda i: (0, i))],
            out_specs=pl.BlockSpec((1, 5), lambda i: (0, 0),
                                   memory_space=pltpu.MemorySpace.SMEM)),
        compiler_params=pltpu.CompilerParams(
            # single grid axis is a reduction -> SMEM accumulator stays resident
            dimension_semantics=("arbitrary",),
            # tiny double-buffered tile (~384 KiB); explicit cap keeps v7x safe
            vmem_limit_bytes=32 * 1024 * 1024),
    )(packed)
    return sums


# ----------------------------------------------------------------------------
# CriterionMATR forward (all hot loss math in one Pallas kernel).
# ----------------------------------------------------------------------------
def criterion_matr_forward(outputs, targets, *, num_queries, segment_size,
                           max_memory_len):
    del num_queries, max_memory_len
    pred_cls = outputs['pred_cls']
    bs, nq, c = pred_cls.shape
    n = bs * nq

    cls_x = pred_cls.reshape(n, c)
    cls_t = targets['cls_label'].reshape(n, c)
    src_regs = outputs['pred_reg'].reshape(n, outputs['pred_reg'].shape[-1])
    src_stcls = outputs['pred_stcls'].reshape(n, outputs['pred_stcls'].shape[-1])
    tgt_regs = targets['reg_label'].reshape(n, 2)
    tgt_stcls = targets['stcls_label'].reshape(n, targets['stcls_label'].shape[-1])

    sums = _fused_losses_sums(cls_x, cls_t, src_regs, src_stcls, tgt_regs,
                              tgt_stcls, segment_size=segment_size)
    cls_sum = sums[0, 0]
    st_sum = sums[0, 1]
    l1_sum = sums[0, 2]
    diou_sum = sums[0, 3]
    fg_cnt = sums[0, 4]

    cnt = jnp.maximum(fg_cnt, 1.0)   # zero-foreground guard (PyTorch: NaN -> 0)
    return {'loss_cls': cls_sum / float(n),
            'loss_reg_l1': l1_sum / (cnt * 2.0),
            'loss_reg_diou': diou_sum / cnt,
            'loss_reg_stcls': st_sum / cnt}


# ----------------------------------------------------------------------------
# Pure-JAX reference (mirrors the PyTorch math) for the correctness check.
# ----------------------------------------------------------------------------
def _reference(outputs, targets, *, segment_size):
    c = outputs['pred_cls'].shape[-1]
    x = outputs['pred_cls'].reshape(-1, c).astype(jnp.float32)
    t = targets['cls_label'].reshape(-1, c).astype(jnp.float32)
    ls = x - jax.scipy.special.logsumexp(x, axis=1, keepdims=True)
    loss_cls = jnp.mean(jnp.sum(-t * ls, axis=1))

    src_regs = outputs['pred_reg'].reshape(-1, outputs['pred_reg'].shape[-1])
    src_stcls = outputs['pred_stcls'].reshape(-1, outputs['pred_stcls'].shape[-1])
    tgt_regs = targets['reg_label'].reshape(-1, 2)
    tgt_stcls = targets['stcls_label'].reshape(-1, targets['stcls_label'].shape[-1])
    fg = tgt_regs[:, 1] >= -1000.0

    xs = src_stcls[fg]
    ts = tgt_stcls[fg]
    lss = xs - jax.scipy.special.logsumexp(xs, axis=1, keepdims=True)
    loss_stcls = jnp.mean(jnp.sum(-ts * lss, axis=1))

    sel = jnp.argmax(xs, axis=1)
    streg = jnp.take_along_axis(src_regs[fg][:, :xs.shape[1]], sel[:, None], axis=1)[:, 0]
    edreg = src_regs[fg][:, -1]
    fgr = jnp.stack([streg, edreg], axis=-1)
    fgt = tgt_regs[fg]
    loss_l1 = jnp.mean(jnp.abs(fgr - fgt))

    def off(regs, sel_):
        return jnp.stack([(regs[:, 0] + sel_) * segment_size,
                          -(regs[:, 1] * segment_size)], axis=-1)

    io = off(fgr, sel.astype(jnp.float32))
    to = off(fgt, jnp.argmax(ts, axis=1).astype(jnp.float32))
    sp, ep = -io[:, 0], io[:, 1]
    sg, eg = -to[:, 0], to[:, 1]
    intsctk = jnp.minimum(ep, eg) - jnp.maximum(sp, sg)
    unionk = (ep - sp) + (eg - sg) - intsctk
    iouk = intsctk / jnp.maximum(unionk, 1e-8)
    len_c = jnp.maximum(ep, eg) - jnp.minimum(sp, sg)
    rho = jnp.abs(0.5 * (ep + sp - eg - sg))
    loss_diou = jnp.mean(1.0 - iouk + jnp.square(rho / jnp.maximum(len_c, 1e-8)))
    return {'loss_cls': loss_cls, 'loss_reg_l1': loss_l1,
            'loss_reg_diou': loss_diou, 'loss_reg_stcls': loss_stcls}


if __name__ == "__main__":
    # Small, module-consistent shapes.
    bs, num_queries = 2, 8
    num_classes = 8
    max_memory_len = 4
    num_stcls = max_memory_len + 2            # 6  (start-class bins)
    reg_dim = max_memory_len + 3              # 7  (start-reg bins + end reg)
    segment_size = 16                         # args.num_frame

    key = jax.random.PRNGKey(0)
    k = jax.random.split(key, 8)

    outputs = {
        'pred_cls':   jax.random.normal(k[0], (bs, num_queries, num_classes), jnp.float32),
        'pred_reg':   jax.random.uniform(k[1], (bs, num_queries, reg_dim), jnp.float32),
        'pred_stcls': jax.random.normal(k[2], (bs, num_queries, num_stcls), jnp.float32),
    }

    cls_ids = jax.random.randint(k[3], (bs, num_queries), 0, num_classes)
    st_ids = jax.random.randint(k[4], (bs, num_queries), 0, num_stcls)
    reg_label = jax.random.uniform(k[5], (bs, num_queries, 2), jnp.float32,
                                   minval=0.1, maxval=0.9)
    # mark a few rows as background (tgt_regs[:, 1] < -1000)
    bg = (jax.random.uniform(k[6], (bs, num_queries)) < 0.25)
    reg_label = reg_label.at[:, :, 1].set(jnp.where(bg, -10000.0, reg_label[:, :, 1]))

    targets = {
        'cls_label':   jax.nn.one_hot(cls_ids, num_classes, dtype=jnp.float32),
        'reg_label':   reg_label,
        'stcls_label': jax.nn.one_hot(st_ids, num_stcls, dtype=jnp.float32),
    }

    losses = criterion_matr_forward(outputs, targets,
                                    num_queries=num_queries,
                                    segment_size=segment_size,
                                    max_memory_len=max_memory_len)
    losses = jax.block_until_ready(losses)

    ref = _reference(outputs, targets, segment_size=segment_size)
    # Looser tolerance for DIoU because its divisions use the EUP approx
    # reciprocal (pl.reciprocal(..., approx=True)).
    tol = {'loss_cls': (1e-4, 1e-5),
           'loss_reg_l1': (1e-4, 1e-5),
           'loss_reg_stcls': (1e-4, 1e-5),
           'loss_reg_diou': (1e-2, 1e-3)}
    for name in losses:
        rtol, atol = tol[name]
        np.testing.assert_allclose(np.asarray(losses[name]),
                                   np.asarray(ref[name]), rtol=rtol, atol=atol)

    print("KERNEL_OK")
</pallas_src>

<mosaic_0001>
module attributes {stable_mosaic.version = 11 : i64} {
  func.func @_fused_loss_kernel(%arg0: i32, %arg1: memref<48x128xf32, #tpu.memory_space<vmem>>, %arg2: memref<1x5xf32, #tpu.memory_space<smem>>) attributes {dimension_semantics = [#tpu.dimension_semantics<arbitrary>], iteration_bounds = array<i64: 1>, scalar_prefetch = 0 : i64, scratch_operands = 0 : i64, tpu.core_type = #tpu.core_type<tc>, window_params = [{transform_indices = @transform_0, window_bounds = array<i64: 48, 128>}, {transform_indices = @transform_1, window_bounds = array<i64: 1, 5>}]} {
    %c0_i32 = arith.constant 0 : i32
    %0 = arith.cmpi eq, %arg0, %c0_i32 : i32
    %1 = arith.extui %0 : i1 to i32
    %c0_i32_0 = arith.constant 0 : i32
    %2 = arith.cmpi ne, %1, %c0_i32_0 : i32
    scf.if %2 {
      %cst_53 = arith.constant 0.000000e+00 : f32
      %c0_54 = arith.constant 0 : index
      %c0_55 = arith.constant 0 : index
      %165 = memref.load %arg2[%c0_54, %c0_55] : memref<1x5xf32, #tpu.memory_space<smem>>
      memref.store %cst_53, %arg2[%c0_54, %c0_55] : memref<1x5xf32, #tpu.memory_space<smem>>
      %cst_56 = arith.constant 0.000000e+00 : f32
      %c0_57 = arith.constant 0 : index
      %c1_58 = arith.constant 1 : index
      %166 = memref.load %arg2[%c0_57, %c1_58] : memref<1x5xf32, #tpu.memory_space<smem>>
      memref.store %cst_56, %arg2[%c0_57, %c1_58] : memref<1x5xf32, #tpu.memory_space<smem>>
      %cst_59 = arith.constant 0.000000e+00 : f32
      %c0_60 = arith.constant 0 : index
      %c2_61 = arith.constant 2 : index
      %167 = memref.load %arg2[%c0_60, %c2_61] : memref<1x5xf32, #tpu.memory_space<smem>>
      memref.store %cst_59, %arg2[%c0_60, %c2_61] : memref<1x5xf32, #tpu.memory_space<smem>>
      %cst_62 = arith.constant 0.000000e+00 : f32
      %c0_63 = arith.constant 0 : index
      %c3_64 = arith.constant 3 : index
      %168 = memref.load %arg2[%c0_63, %c3_64] : memref<1x5xf32, #tpu.memory_space<smem>>
      memref.store %cst_62, %arg2[%c0_63, %c3_64] : memref<1x5xf32, #tpu.memory_space<smem>>
      %cst_65 = arith.constant 0.000000e+00 : f32
      %c0_66 = arith.constant 0 : index
      %c4_67 = arith.constant 4 : index
      %169 = memref.load %arg2[%c0_66, %c4_67] : memref<1x5xf32, #tpu.memory_space<smem>>
      memref.store %cst_65, %arg2[%c0_66, %c4_67] : memref<1x5xf32, #tpu.memory_space<smem>>
    } else {
    }
    %c0 = arith.constant 0 : index
    %c0_1 = arith.constant 0 : index
    %3 = vector.load %arg1[%c0, %c0_1] : memref<48x128xf32, #tpu.memory_space<vmem>>, vector<8x128xf32>
    %c8 = arith.constant 8 : index
    %c0_2 = arith.constant 0 : index
    %4 = vector.load %arg1[%c8, %c0_2] : memref<48x128xf32, #tpu.memory_space<vmem>>, vector<8x128xf32>
    %c16 = arith.constant 16 : index
    %c0_3 = arith.constant 0 : index
    %5 = vector.load %arg1[%c16, %c0_3] : memref<48x128xf32, #tpu.memory_space<vmem>>, vector<8x128xf32>
    %c24 = arith.constant 24 : index
    %c0_4 = arith.constant 0 : index
    %6 = vector.load %arg1[%c24, %c0_4] : memref<48x128xf32, #tpu.memory_space<vmem>>, vector<8x128xf32>
    %c32 = arith.constant 32 : index
    %c0_5 = arith.constant 0 : index
    %7 = vector.load %arg1[%c32, %c0_5] : memref<48x128xf32, #tpu.memory_space<vmem>>, vector<8x128xf32>
    %c40 = arith.constant 40 : index
    %c0_6 = arith.constant 0 : index
    %8 = vector.load %arg1[%c40, %c0_6] : memref<48x128xf32, #tpu.memory_space<vmem>>, vector<8x128xf32>
    %cst = arith.constant dense<0xFF800000> : vector<128xf32>
    %9 = vector.multi_reduction <maximumf>, %3, %cst [0] : vector<8x128xf32> to vector<128xf32>
    %10 = vector.shape_cast %9 : vector<128xf32> to vector<1x128xf32>
    %11 = vector.broadcast %10 : vector<1x128xf32> to vector<8x128xf32>
    %12 = arith.subf %3, %11 : vector<8x128xf32>
    %13 = math.exp %12 : vector<8x128xf32>
    %cst_7 = arith.constant dense<0.000000e+00> : vector<128xf32>
    %14 = vector.multi_reduction <add>, %13, %cst_7 [0] : vector<8x128xf32> to vector<128xf32>
    %15 = vector.shape_cast %14 : vector<128xf32> to vector<1x128xf32>
    %16 = math.log %15 : vector<1x128xf32>
    %17 = arith.addf %16, %10 : vector<1x128xf32>
    %cst_8 = arith.constant 0.000000e+00 : f32
    %18 = vector.broadcast %cst_8 : f32 to vector<8x128xf32>
    %19 = arith.subf %18, %4 : vector<8x128xf32>
    %20 = vector.broadcast %17 : vector<1x128xf32> to vector<8x128xf32>
    %21 = arith.subf %3, %20 : vector<8x128xf32>
    %22 = arith.mulf %19, %21 : vector<8x128xf32>
    %23 = vector.shape_cast %22 : vector<8x128xf32> to vector<1x8x128xf32>
    %cst_9 = arith.constant dense<0.000000e+00> : vector<1xf32>
    %24 = vector.multi_reduction <add>, %23, %cst_9 [1, 2] : vector<1x8x128xf32> to vector<1xf32>
    %25 = vector.shape_cast %24 : vector<1xf32> to vector<1x1x1xf32>
    %26 = vector.extract %25[0, 0, 0] : f32 from vector<1x1x1xf32>
    %27 = vector.extract_strided_slice %7 {offsets = [0, 0], sizes = [1, 128], strides = [1, 1]} : vector<8x128xf32> to vector<1x128xf32>
    %28 = vector.extract_strided_slice %7 {offsets = [1, 0], sizes = [1, 128], strides = [1, 1]} : vector<8x128xf32> to vector<1x128xf32>
    %cst_10 = arith.constant -1.000000e+03 : f32
    %29 = vector.broadcast %cst_10 : f32 to vector<1x128xf32>
    %30 = arith.cmpf oge, %28, %29 : vector<1x128xf32>
    %31 = arith.extui %30 : vector<1x128xi1> to vector<1x128xi32>
    %32 = arith.sitofp %31 : vector<1x128xi32> to vector<1x128xf32>
    %33 = vector.shape_cast %32 : vector<1x128xf32> to vector<1x1x128xf32>
    %cst_11 = arith.constant dense<0.000000e+00> : vector<1xf32>
    %34 = vector.multi_reduction <add>, %33, %cst_11 [1, 2] : vector<1x1x128xf32> to vector<1xf32>
    %35 = vector.shape_cast %34 : vector<1xf32> to vector<1x1x1xf32>
    %36 = vector.extract %35[0, 0, 0] : f32 from vector<1x1x1xf32>
    %cst_12 = arith.constant dense<0xFF800000> : vector<128xf32>
    %37 = vector.multi_reduction <maximumf>, %6, %cst_12 [0] : vector<8x128xf32> to vector<128xf32>
    %38 = vector.shape_cast %37 : vector<128xf32> to vector<1x128xf32>
    %39 = vector.broadcast %38 : vector<1x128xf32> to vector<8x128xf32>
    %40 = arith.subf %6, %39 : vector<8x128xf32>
    %41 = math.exp %40 : vector<8x128xf32>
    %cst_13 = arith.constant dense<0.000000e+00> : vector<128xf32>
    %42 = vector.multi_reduction <add>, %41, %cst_13 [0] : vector<8x128xf32> to vector<128xf32>
    %43 = vector.shape_cast %42 : vector<128xf32> to vector<1x128xf32>
    %44 = math.log %43 : vector<1x128xf32>
    %45 = arith.addf %44, %38 : vector<1x128xf32>
    %cst_14 = arith.constant 0.000000e+00 : f32
    %46 = vector.broadcast %cst_14 : f32 to vector<8x128xf32>
    %47 = arith.subf %46, %8 : vector<8x128xf32>
    %48 = vector.broadcast %45 : vector<1x128xf32> to vector<8x128xf32>
    %49 = arith.subf %6, %48 : vector<8x128xf32>
    %50 = arith.mulf %47, %49 : vector<8x128xf32>
    %cst_15 = arith.constant dense<0.000000e+00> : vector<128xf32>
    %51 = vector.multi_reduction <add>, %50, %cst_15 [0] : vector<8x128xf32> to vector<128xf32>
    %52 = vector.shape_cast %51 : vector<128xf32> to vector<1x128xf32>
    %53 = arith.mulf %52, %32 : vector<1x128xf32>
    %54 = vector.shape_cast %53 : vector<1x128xf32> to vector<1x1x128xf32>
    %cst_16 = arith.constant dense<0.000000e+00> : vector<1xf32>
    %55 = vector.multi_reduction <add>, %54, %cst_16 [1, 2] : vector<1x1x128xf32> to vector<1xf32>
    %56 = vector.shape_cast %55 : vector<1xf32> to vector<1x1x1xf32>
    %57 = vector.extract %56[0, 0, 0] : f32 from vector<1x1x1xf32>
    %58 = tpu.iota {dimensions = array<i32: 0>} : vector<8x128xi32>
    %59 = vector.broadcast %38 : vector<1x128xf32> to vector<8x128xf32>
    %60 = arith.cmpf oge, %6, %59 : vector<8x128xf32>
    %c8_i32 = arith.constant 8 : i32
    %61 = vector.broadcast %c8_i32 : i32 to vector<8x128xi32>
    %62 = arith.select %60, %58, %61 : vector<8x128xi1>, vector<8x128xi32>
    %cst_17 = arith.constant dense<2147483647> : vector<128xi32>
    %63 = vector.multi_reduction <minsi>, %62, %cst_17 [0] : vector<8x128xi32> to vector<128xi32>
    %64 = vector.shape_cast %63 : vector<128xi32> to vector<1x128xi32>
    %cst_18 = arith.constant dense<0xFF800000> : vector<128xf32>
    %65 = vector.multi_reduction <maximumf>, %8, %cst_18 [0] : vector<8x128xf32> to vector<128xf32>
    %66 = vector.shape_cast %65 : vector<128xf32> to vector<1x128xf32>
    %67 = vector.broadcast %66 : vector<1x128xf32> to vector<8x128xf32>
    %68 = arith.cmpf oge, %8, %67 : vector<8x128xf32>
    %c8_i32_19 = arith.constant 8 : i32
    %69 = vector.broadcast %c8_i32_19 : i32 to vector<8x128xi32>
    %70 = arith.select %68, %58, %69 : vector<8x128xi1>, vector<8x128xi32>
    %cst_20 = arith.constant dense<2147483647> : vector<128xi32>
    %71 = vector.multi_reduction <minsi>, %70, %cst_20 [0] : vector<8x128xi32> to vector<128xi32>
    %72 = vector.shape_cast %71 : vector<128xi32> to vector<1x128xi32>
    %73 = vector.broadcast %64 : vector<1x128xi32> to vector<8x128xi32>
    %74 = arith.cmpi eq, %58, %73 : vector<8x128xi32>
    %75 = arith.extui %74 : vector<8x128xi1> to vector<8x128xi32>
    %76 = arith.sitofp %75 : vector<8x128xi32> to vector<8x128xf32>
    %77 = arith.mulf %5, %76 : vector<8x128xf32>
    %cst_21 = arith.constant dense<0.000000e+00> : vector<128xf32>
    %78 = vector.multi_reduction <add>, %77, %cst_21 [0] : vector<8x128xf32> to vector<128xf32>
    %79 = vector.shape_cast %78 : vector<128xf32> to vector<1x128xf32>
    %c6_i32 = arith.constant 6 : i32
    %80 = vector.broadcast %c6_i32 : i32 to vector<8x128xi32>
    %81 = arith.cmpi eq, %58, %80 : vector<8x128xi32>
    %82 = arith.extui %81 : vector<8x128xi1> to vector<8x128xi32>
    %83 = arith.sitofp %82 : vector<8x128xi32> to vector<8x128xf32>
    %84 = arith.mulf %5, %83 : vector<8x128xf32>
    %cst_22 = arith.constant dense<0.000000e+00> : vector<128xf32>
    %85 = vector.multi_reduction <add>, %84, %cst_22 [0] : vector<8x128xf32> to vector<128xf32>
    %86 = vector.shape_cast %85 : vector<128xf32> to vector<1x128xf32>
    %87 = arith.subf %79, %27 : vector<1x128xf32>
    %88 = math.absf %87 : vector<1x128xf32>
    %89 = arith.subf %86, %28 : vector<1x128xf32>
    %90 = math.absf %89 : vector<1x128xf32>
    %91 = arith.addf %88, %90 : vector<1x128xf32>
    %92 = arith.mulf %91, %32 : vector<1x128xf32>
    %93 = vector.shape_cast %92 : vector<1x128xf32> to vector<1x1x128xf32>
    %cst_23 = arith.constant dense<0.000000e+00> : vector<1xf32>
    %94 = vector.multi_reduction <add>, %93, %cst_23 [1, 2] : vector<1x1x128xf32> to vector<1xf32>
    %95 = vector.shape_cast %94 : vector<1xf32> to vector<1x1x1xf32>
    %96 = vector.extract %95[0, 0, 0] : f32 from vector<1x1x1xf32>
    %97 = arith.sitofp %64 : vector<1x128xi32> to vector<1x128xf32>
    %98 = arith.addf %79, %97 : vector<1x128xf32>
    %cst_24 = arith.constant 0.000000e+00 : f32
    %99 = vector.broadcast %cst_24 : f32 to vector<1x128xf32>
    %100 = arith.subf %99, %98 : vector<1x128xf32>
    %cst_25 = arith.constant 1.600000e+01 : f32
    %101 = vector.broadcast %cst_25 : f32 to vector<1x128xf32>
    %102 = arith.mulf %100, %101 : vector<1x128xf32>
    %cst_26 = arith.constant 0.000000e+00 : f32
    %103 = vector.broadcast %cst_26 : f32 to vector<1x128xf32>
    %104 = arith.subf %103, %86 : vector<1x128xf32>
    %cst_27 = arith.constant 1.600000e+01 : f32
    %105 = vector.broadcast %cst_27 : f32 to vector<1x128xf32>
    %106 = arith.mulf %104, %105 : vector<1x128xf32>
    %107 = arith.sitofp %72 : vector<1x128xi32> to vector<1x128xf32>
    %108 = arith.addf %27, %107 : vector<1x128xf32>
    %cst_28 = arith.constant 0.000000e+00 : f32
    %109 = vector.broadcast %cst_28 : f32 to vector<1x128xf32>
    %110 = arith.subf %109, %108 : vector<1x128xf32>
    %cst_29 = arith.constant 1.600000e+01 : f32
    %111 = vector.broadcast %cst_29 : f32 to vector<1x128xf32>
    %112 = arith.mulf %110, %111 : vector<1x128xf32>
    %cst_30 = arith.constant 0.000000e+00 : f32
    %113 = vector.broadcast %cst_30 : f32 to vector<1x128xf32>
    %114 = arith.subf %113, %28 : vector<1x128xf32>
    %cst_31 = arith.constant 1.600000e+01 : f32
    %115 = vector.broadcast %cst_31 : f32 to vector<1x128xf32>
    %116 = arith.mulf %114, %115 : vector<1x128xf32>
    %117 = arith.minimumf %106, %116 : vector<1x128xf32>
    %118 = arith.maximumf %102, %112 : vector<1x128xf32>
    %119 = arith.subf %117, %118 : vector<1x128xf32>
    %120 = arith.subf %106, %102 : vector<1x128xf32>
    %121 = arith.subf %116, %112 : vector<1x128xf32>
    %122 = arith.addf %120, %121 : vector<1x128xf32>
    %123 = arith.subf %122, %119 : vector<1x128xf32>
    %cst_32 = arith.constant 9.99999993E-9 : f32
    %124 = vector.broadcast %cst_32 : f32 to vector<1x128xf32>
    %125 = arith.maximumf %123, %124 : vector<1x128xf32>
    %126 = tpu.reciprocal %125 {approx = true} : vector<1x128xf32> -> vector<1x128xf32>
    %127 = arith.mulf %119, %126 : vector<1x128xf32>
    %128 = arith.maximumf %106, %116 : vector<1x128xf32>
    %129 = arith.minimumf %102, %112 : vector<1x128xf32>
    %130 = arith.subf %128, %129 : vector<1x128xf32>
    %131 = arith.addf %106, %102 : vector<1x128xf32>
    %132 = arith.subf %131, %116 : vector<1x128xf32>
    %133 = arith.subf %132, %112 : vector<1x128xf32>
    %cst_33 = arith.constant 5.000000e-01 : f32
    %134 = vector.broadcast %cst_33 : f32 to vector<1x128xf32>
    %135 = arith.mulf %134, %133 : vector<1x128xf32>
    %136 = math.absf %135 : vector<1x128xf32>
    %cst_34 = arith.constant 9.99999993E-9 : f32
    %137 = vector.broadcast %cst_34 : f32 to vector<1x128xf32>
    %138 = arith.maximumf %130, %137 : vector<1x128xf32>
    %139 = tpu.reciprocal %138 {approx = true} : vector<1x128xf32> -> vector<1x128xf32>
    %140 = arith.mulf %136, %139 : vector<1x128xf32>
    %cst_35 = arith.constant 1.000000e+00 : f32
    %141 = vector.broadcast %cst_35 : f32 to vector<1x128xf32>
    %142 = arith.subf %141, %127 : vector<1x128xf32>
    %143 = arith.mulf %140, %140 : vector<1x128xf32>
    %144 = arith.addf %142, %143 : vector<1x128xf32>
    %145 = arith.mulf %144, %32 : vector<1x128xf32>
    %146 = vector.shape_cast %145 : vector<1x128xf32> to vector<1x1x128xf32>
    %cst_36 = arith.constant dense<0.000000e+00> : vector<1xf32>
    %147 = vector.multi_reduction <add>, %146, %cst_36 [1, 2] : vector<1x1x128xf32> to vector<1xf32>
    %148 = vector.shape_cast %147 : vector<1xf32> to vector<1x1x1xf32>
    %149 = vector.extract %148[0, 0, 0] : f32 from vector<1x1x1xf32>
    %c0_37 = arith.constant 0 : index
    %c0_38 = arith.constant 0 : index
    %150 = memref.load %arg2[%c0_37, %c0_38] : memref<1x5xf32, #tpu.memory_space<smem>>
    %151 = arith.addf %150, %26 : f32
    %c0_39 = arith.constant 0 : index
    %c0_40 = arith.constant 0 : index
    %152 = memref.load %arg2[%c0_39, %c0_40] : memref<1x5xf32, #tpu.memory_space<smem>>
    memref.store %151, %arg2[%c0_39, %c0_40] : memref<1x5xf32, #tpu.memory_space<smem>>
    %c0_41 = arith.constant 0 : index
    %c1 = arith.constant 1 : index
    %153 = memref.load %arg2[%c0_41, %c1] : memref<1x5xf32, #tpu.memory_space<smem>>
    %154 = arith.addf %153, %57 : f32
    %c0_42 = arith.constant 0 : index
    %c1_43 = arith.constant 1 : index
    %155 = memref.load %arg2[%c0_42, %c1_43] : memref<1x5xf32, #tpu.memory_space<smem>>
    memref.store %154, %arg2[%c0_42, %c1_43] : memref<1x5xf32, #tpu.memory_space<smem>>
    %c0_44 = arith.constant 0 : index
    %c2 = arith.constant 2 : index
    %156 = memref.load %arg2[%c0_44, %c2] : memref<1x5xf32, #tpu.memory_space<smem>>
    %157 = arith.addf %156, %96 : f32
    %c0_45 = arith.constant 0 : index
    %c2_46 = arith.constant 2 : index
    %158 = memref.load %arg2[%c0_45, %c2_46] : memref<1x5xf32, #tpu.memory_space<smem>>
    memref.store %157, %arg2[%c0_45, %c2_46] : memref<1x5xf32, #tpu.memory_space<smem>>
    %c0_47 = arith.constant 0 : index
    %c3 = arith.constant 3 : index
    %159 = memref.load %arg2[%c0_47, %c3] : memref<1x5xf32, #tpu.memory_space<smem>>
    %160 = arith.addf %159, %149 : f32
    %c0_48 = arith.constant 0 : index
    %c3_49 = arith.constant 3 : index
    %161 = memref.load %arg2[%c0_48, %c3_49] : memref<1x5xf32, #tpu.memory_space<smem>>
    memref.store %160, %arg2[%c0_48, %c3_49] : memref<1x5xf32, #tpu.memory_space<smem>>
    %c0_50 = arith.constant 0 : index
    %c4 = arith.constant 4 : index
    %162 = memref.load %arg2[%c0_50, %c4] : memref<1x5xf32, #tpu.memory_space<smem>>
    %163 = arith.addf %162, %36 : f32
    %c0_51 = arith.constant 0 : index
    %c4_52 = arith.constant 4 : index
    %164 = memref.load %arg2[%c0_51, %c4_52] : memref<1x5xf32, #tpu.memory_space<smem>>
    memref.store %163, %arg2[%c0_51, %c4_52] : memref<1x5xf32, #tpu.memory_space<smem>>
    return
  }
  func.func @transform_0(%arg0: i32) -> (i32, i32) {
    %c0_i32 = arith.constant 0 : i32
    %c0_i32_0 = arith.constant 0 : i32
    return %c0_i32, %arg0 : i32, i32
  }
  func.func @transform_1(%arg0: i32) -> (i32, i32) {
    %c0_i32 = arith.constant 0 : i32
    %c0_i32_0 = arith.constant 0 : i32
    %c0_i32_1 = arith.constant 0 : i32
    return %c0_i32, %c0_i32_0 : i32, i32
  }
}

</mosaic_0001>

<bundles_post_ra>
// kernel: tpu_custom_call.1
= control target key start
LH: loop header
LB: loop body
LE: loop exit
PB: predicated region body
PF: predicated region fallthrough
CT: control target
= control target key end

     0   :  { %6 = vsyncpa [#allocation3], 0  ;;  %s435_s0 = inlined_call_operand.hbm [shape: f32[48,128], index: 0, kind: input, shape index: {}]   ;;  %s436_s1 = inlined_call_operand.hbm [shape: f32[1,5], index: 1, kind: output, shape index: {}]  }
   0x1   :  { %7 = vsyncpa [#allocation4], 0  ;;  %s12_s8 = sshll.u32 %s435_s0, 4  ;;  %s372_s9 = smov [#allocation2]   ;;  %s13_s8 = int_to_ptr.hbm [resolvable:$true] %s12_s8 }
   0x2   :  { %s14_s10 = sshll.u32 %s372_s9, 4  ;;  %s373_s11 = smov 128   ;;  %s15_s10 = int_to_ptr.vmem [resolvable:$true] %s14_s10 }
   0x3   :  { %s374_s12 = smov 8  }
   0x4   :  { %20 = dma.hbm_to_vmem [thread:$0]  %s13_s8, 768, %s15_s10, [#allocation3], %s373_s11, %s373_s11, %s374_s12  }
   0x5   :  { %368 = dma.done.wait [#allocation3], 768  }
   0x6   :  { %369 = vsyncadd [#allocation3], 4294966528  ;;  %v390_v0 = vld [vmem:[#allocation2] sm:$0xff]  ;;  %v392_v1 = vld [vmem:[#allocation2 + $0x18] sm:$0xff]  ;;  %v133_v5 = vlaneseq  ;;  %v375_v20 = vmov 0.0   ;;  %vm81_vm11 = vcmask 1040384  }
   0x7   :  { %v45_v2 = vrot.slane %v390_v0, 4  ;;  %v395_v3 = vld [vmem:[#allocation2 + $0x28] sm:$0xff]  ;;  %v92_v4 = vrot.slane %v392_v1, 4  ;;  %v41_v25 = vld [vmem:[#allocation2 + $0x10] sm:$0xff]  ;;  %v414_v54 = vld [vmem:[#allocation2 + $0x20] sm:$0xff]  ;;  %s286_s17 = sshll.u32 %s436_s1, 4  ;;  %s287_s17 = int_to_ptr.hbm [resolvable:$true] %s286_s17 }
   0x8   :  { %v146_v6 = vrot.slane %v395_v3, 4  ;;  %v134_v12 = vshrl.u32 %v133_v5, 7  ;;  %vm75_vm10 = vcmp.ge.f32.partialorder %v414_v54, -1000.0  ;;  %s376_s20 = smov [#allocation5]  }
   0x9   :  { %v46_v7 = vmax.f32 %v390_v0, %v45_v2  ;;  %v93_v8 = vmax.f32 %v392_v1, %v92_v4 }
   0xa   :  { %v147_v9 = vmax.f32 %v395_v3, %v146_v6  ;;  %vm173_vm0 = vcmp.eq.s32.totalorder %v134_v12, 6 }
   0xb   :  { %v47_v10 = vrot.slane %v46_v7, 2  ;;  %v94_v11 = vrot.slane %v93_v8, 2  ;;  %v299_v21 = vsel %vm173_vm0, 1.0, %v375_v20 }
   0xc   :  { %v148_v13 = vrot.slane %v147_v9, 2  ;;  %v176_v28 = vmul.f32 %v299_v21, %v41_v25 }
   0xd   :  { %v48_v14 = vmax.f32 %v46_v7, %v47_v10  ;;  %v95_v15 = vmax.f32 %v93_v8, %v94_v11 }
   0xe   :  { %v149_v16 = vmax.f32 %v147_v9, %v148_v13  ;;  %v177_v35 = vrot.slane %v176_v28, 4 }
   0xf   :  { %v49_v17 = vrot.slane %v48_v14, 1  ;;  %v96_v18 = vrot.slane %v95_v15, 1 }
  0x10   :  { %v150_v19 = vrot.slane %v149_v16, 1  ;;  %v178_v39 = vadd.f32 %v177_v35, %v176_v28 }
  0x11   :  { %v403_v22 = vmax.f32 %v48_v14, %v49_v17  ;;  %v405_v23 = vmax.f32 %v95_v15, %v96_v18  ;;  %v212_v15 = vsub.f32 0.0, %v414_v54 }
  0x12   :  { %v151_v24 = vmax.f32 %v149_v16, %v150_v19  ;;  %v179_v48 = vrot.slane %v178_v39, 2 }
  0x13   :  { %v51_v26 = vsub.f32 %v390_v0, %v403_v22  ;;  %v98_v27 = vsub.f32 %v392_v1, %v405_v23  ;;  %vm135_vm1 = vcmp.ge.f32.partialorder %v392_v1, %v405_v23 }
  0x14   :  { %v136_v29 = vsel %vm135_vm1, %v134_v12, 8  ;;  %vm152_vm2 = vcmp.ge.f32.partialorder %v395_v3, %v151_v24  ;;  %v180_v59 = vadd.f32 %v179_v48, %v178_v39  ;;  %v40_v24 = vld [vmem:[#allocation2 + $0x8] sm:$0xff] }
  0x15   :  { %v52_v30 = vmul.f32 1.442695, %v51_v26  ;;  %v99_v31 = vmul.f32 1.442695, %v98_v27  ;;  %v137_v32 = vrot.slane %v136_v29, 4  ;;  %v153_v33 = vsel %vm152_vm2, %v134_v12, 8 }
  0x16   :  { %v154_v34 = vrot.slane %v153_v33, 4  ;;  %v181_v7 = vrot.slane %v180_v59, 1  ;;  %v213_v27 = vmul.f32 16.0, %v212_v15 }
  0x17   :  { %320 = vpow2.f32 %v52_v30  ;;  %vm138_vm3 = vcmp.lt.s32.totalorder %v136_v29, %v137_v32 }
  0x18   :  { %322 = vpow2.f32 %v99_v31  ;;  %v139_v36 = vsel %vm138_vm3, %v136_v29, %v137_v32  ;;  %vm155_vm4 = vcmp.lt.s32.totalorder %v153_v33, %v154_v34  ;;  %v182_v13 = vadd.f32 %v181_v7, %v180_v59 }
  0x19   :  { %v140_v37 = vrot.slane %v139_v36, 2  ;;  %v156_v38 = vsel %vm155_vm4, %v153_v33, %v154_v34  ;;  %v63_v32 = vsub.f32 0.0, %v40_v24 }
  0x1a   :  { %v157_v40 = vrot.slane %v156_v38, 2  ;;  %v206_v19 = vsub.f32 0.0, %v182_v13 }
  0x1b   :  { %vm141_vm5 = vcmp.lt.s32.totalorder %v139_v36, %v140_v37 }
  0x1c   :  { %v142_v41 = vsel %vm141_vm5, %v139_v36, %v140_v37  ;;  %vm158_vm6 = vcmp.lt.s32.totalorder %v156_v38, %v157_v40  ;;  %v207_v34 = vmul.f32 16.0, %v206_v19  ;;  %v110_v36 = vsub.f32 0.0, %v395_v3 }
  0x1d   :  { %v321_v42 = vpop.eup %320  ;;  %v143_v43 = vrot.slane %v142_v41, 1  ;;  %v159_v46 = vsel %vm158_vm6, %v156_v38, %v157_v40 }
  0x1e   :  { %v323_v44 = vpop.eup %322  ;;  %v54_v45 = vrot.slane %v321_v42, 4  ;;  %v160_v49 = vrot.slane %v159_v46, 1 }
  0x1f   :  { %v101_v47 = vrot.slane %v323_v44, 4  ;;  %vm144_vm7 = vcmp.lt.s32.totalorder %v142_v41, %v143_v43 }
  0x20   :  { %v55_v50 = vadd.f32 %v321_v42, %v54_v45  ;;  %v145_v51 = vsel %vm144_vm7, %v142_v41, %v143_v43  ;;  %vm161_vm9 = vcmp.lt.s32.totalorder %v159_v46, %v160_v49  ;;  %v214_v42 = vmin.f32 %v207_v34, %v213_v27 }
  0x21   :  { %v102_v52 = vadd.f32 %v323_v44, %v101_v47  ;;  %vm163_vm8 = vcmp.eq.s32.totalorder %v134_v12, %v145_v51  ;;  %v162_v56 = vsel %vm161_vm9, %v159_v46, %v160_v49  ;;  %v202_v14 = vcvt.s32.f32 %v145_v51 }
  0x22   :  { %v56_v53 = vrot.slane %v55_v50, 2  ;;  %v298_v55 = vsel %vm163_vm8, 1.0, %v375_v20  ;;  %v208_v60 = vcvt.s32.f32 %v162_v56  ;;  %v230_v45 = vmax.f32 %v207_v34, %v213_v27 }
  0x23   :  { %v103_v57 = vrot.slane %v102_v52, 2  ;;  %v166_v58 = vmul.f32 %v298_v55, %v41_v25 }
  0x24   :  { %v57_v61 = vadd.f32 %v56_v53, %v55_v50  ;;  %v209_v2 = vadd.f32 %v208_v60, %v414_v54  ;;  %v185_v53 = vsub.f32 %v182_v13, %v414_v54 }
  0x25   :  { %v104_v62 = vadd.f32 %v103_v57, %v102_v52  ;;  %v167_v63 = vrot.slane %v166_v58, 4 }
  0x26   :  { %v58_v4 = vrot.slane %v57_v61, 1  ;;  %v210_v11 = vsub.f32 0.0, %v209_v2  ;;  %v186_v2 = vand.u32 2147483647, %v185_v53 }
  0x27   :  { %v105_v5 = vrot.slane %v104_v62, 1  ;;  %v168_v6 = vadd.f32 %v167_v63, %v166_v58 }
  0x28   :  { %v59_v8 = vadd.f32 %v58_v4, %v57_v61  ;;  %v211_v17 = vmul.f32 16.0, %v210_v11 }
  0x29   :  { %v106_v9 = vadd.f32 %v105_v5, %v104_v62  ;;  %v169_v10 = vrot.slane %v168_v6, 2 }
  0x2a   :  { %324 = vlog2.f32 %v59_v8  ;;  %v222_v29 = vrot.slane %v211_v17, 7  ;;  %v188_v8 = vrot.slane %v186_v2, 1 }
  0x2b   :  { %326 = vlog2.f32 %v106_v9  ;;  %v170_v12 = vadd.f32 %v169_v10, %v168_v6 }
  0x2c   :  { %v224_v39 = vsub.f32 %v213_v27, %v222_v29 }
  0x2d   :  { %v171_v16 = vrot.slane %v170_v12, 1 }
  0x2f   :  { %v172_v18 = vadd.f32 %v171_v16, %v170_v12 }
  0x30   :  { %v325_v21 = vpop.eup %324 }
  0x31   :  { %v327_v25 = vpop.eup %326  ;;  %v61_v26 = vmul.f32 0.6931472, %v325_v21  ;;  %v203_v28 = vadd.f32 %v202_v14, %v172_v18  ;;  %v183_v63 = vsub.f32 %v172_v18, %v414_v54 }
  0x32   :  { %v108_v30 = vmul.f32 0.6931472, %v327_v25 }
  0x33   :  { %v62_v31 = vadd.f32 %v61_v26, %v403_v22  ;;  %v204_v33 = vsub.f32 0.0, %v203_v28  ;;  %v184_v7 = vand.u32 2147483647, %v183_v63 }
  0x34   :  { %v109_v35 = vadd.f32 %v108_v30, %v405_v23  ;;  %v297_v23 = vsel %vm75_vm10, 1.0, %v375_v20 }
  0x35   :  { %v64_v37 = vsub.f32 %v390_v0, %v62_v31  ;;  %v205_v38 = vmul.f32 16.0, %v204_v33  ;;  %v79_v49 = vrot.slane %v297_v23, 1  ;;  %v190_v14 = vadd.f32 %v188_v8, %v184_v7 }
  0x36   :  { %v111_v40 = vsub.f32 %v392_v1, %v109_v35 }
  0x37   :  { %v65_v41 = vmul.f32 %v64_v37, %v63_v32  ;;  %v215_v43 = vmax.f32 %v205_v38, %v211_v17  ;;  %v220_v44 = vsub.f32 %v207_v34, %v205_v38  ;;  %v231_v46 = vmin.f32 %v205_v38, %v211_v17 }
  0x38   :  { %v112_v22 = vmul.f32 %v111_v40, %v110_v36  ;;  %v236_v47 = vadd.f32 %v207_v34, %v205_v38  ;;  %v82_v59 = vsel %vm81_vm11, %v79_v49, 0.0  ;;  %v191_v18 = vmul.f32 %v190_v14, %v79_v49 }
  0x39   :  { %66 = vadd.xlane.f32.xlu0 %v65_v41  ;;  %v217_v3 = vrot.slane %v215_v43, 7  ;;  %v225_v48 = vadd.f32 %v224_v39, %v220_v44  ;;  %v233_v50 = vrot.slane %v231_v46, 7 }
  0x3a   :  { %v113_v0 = vrot.slane %v112_v22, 4  ;;  %v237_v51 = vsub.f32 %v236_v47, %v213_v27  ;;  %v192_v24 = vsel %vm81_vm11, %v191_v18, 0.0 }
  0x3b   :  { %v219_v52 = vsub.f32 %v214_v42, %v217_v3  ;;  %v235_v55 = vsub.f32 %v230_v45, %v233_v50 }
  0x3c   :  { %v114_v1 = vadd.f32 %v113_v0, %v112_v22  ;;  %v238_v56 = vsub.f32 %v237_v51, %v222_v29 }
  0x3d   :  { %v226_v57 = vsub.f32 %v225_v48, %v219_v52  ;;  %v241_v60 = vmax.f32 %v235_v55, 1e-08 }
  0x3e   :  { %v115_v58 = vrot.slane %v114_v1, 2  ;;  %v239_v20 = vmul.f32 0.5, %v238_v56 }
  0x3f   :  { %v227_v61 = vmax.f32 %v226_v57, 1e-08  ;;  %328 = vrcp.f32 %v241_v60 }
  0x40   :  { %v116_v62 = vadd.f32 %v115_v58, %v114_v1  ;;  %v240_v5 = vand.u32 2147483647, %v239_v20 }
  0x41   :  { %83 = vadd.xlane.f32.xlu0 %v82_v59  ;;  %330 = vrcp.f32 %v227_v61 }
  0x42   :  { %v117_v4 = vrot.slane %v116_v62, 1 }
  0x44   :  { %v118_v6 = vadd.f32 %v117_v4, %v116_v62 }
  0x45   :  { %v329_v9 = vpop.eup %328 }
  0x46   :  { %v119_v10 = vmul.f32 %v297_v23, %v118_v6  ;;  %v243_v12 = vmul.f32 %v329_v9, %v240_v5 }
  0x47   :  { %v331_v11 = vpop.eup %330 }
  0x48   :  { %v121_v13 = vrot.slane %v119_v10, 1  ;;  %v229_v15 = vmul.f32 %v331_v11, %v219_v52  ;;  %v245_v16 = vmul.f32 %v243_v12, %v243_v12 }
  0x4a   :  { %v123_v17 = vsel %vm81_vm11, %v121_v13, 0.0  ;;  %v244_v54 = vsub.f32 1.0, %v229_v15 }
  0x4b   :  { %124 = vadd.xlane.f32.xlu1 %v123_v17 }
  0x4c   :  { %v246_v19 = vadd.f32 %v245_v16, %v244_v54 }
  0x4e   :  { %v247_v21 = vmul.f32 %v297_v23, %v246_v19 }
  0x50   :  { %v249_v25 = vrot.slane %v247_v21, 1 }
  0x52   :  { %v251_v26 = vsel %vm81_vm11, %v249_v25, 0.0 }
  0x53   :  { %193 = vadd.xlane.f32.xlu1 %v192_v24  ;;  %252 = vadd.xlane.f32.xlu2 %v251_v26 }
  0xac   :  { %v67_v27 = vpop.xlane.xlu0 %66 }
  0xad   :  { %v68_v28 = vrot.slane %v67_v27, 4 }
  0xaf   :  { %v69_v29 = vadd.f32 %v68_v28, %v67_v27 }
  0xb1   :  { %v70_v30 = vrot.slane %v69_v29, 2 }
  0xb3   :  { %v71_v31 = vadd.f32 %v70_v30, %v69_v29 }
  0xb4   :  { %v84_v32 = vpop.xlane.xlu0 %83 }
  0xb5   :  { %v85_v33 = vrot.slane %v84_v32, 4  ;;  %v72_v34 = vrot.slane %v71_v31, 1 }
  0xb7   :  { %v86_v35 = vadd.f32 %v85_v33, %v84_v32  ;;  %v73_v36 = vadd.f32 %v72_v34, %v71_v31 }
  0xb9   :  { %v87_v37 = vrot.slane %v86_v35, 2  ;;  %304 = vpush %v73_v36 }
  0xbb   :  { %v88_v38 = vadd.f32 %v87_v37, %v86_v35 }
  0xbd   :  { %v89_v39 = vrot.slane %v88_v38, 1 }
  0xbe   :  { %v125_v40 = vpop.xlane.xlu1 %124 }
  0xbf   :  { %v126_v41 = vrot.slane %v125_v40, 4  ;;  %v90_v42 = vadd.f32 %v89_v39, %v88_v38 }
  0xc1   :  { %v127_v43 = vadd.f32 %v126_v41, %v125_v40  ;;  %306 = vpush %v90_v42 }
  0xc3   :  { %v128_v44 = vrot.slane %v127_v43, 2 }
  0xc5   :  { %v129_v22 = vadd.f32 %v128_v44, %v127_v43 }
  0xc6   :  { %v194_v45 = vpop.xlane.xlu1 %193  ;;  %v253_v46 = vpop.xlane.xlu2 %252 }
  0xc7   :  { %v195_v47 = vrot.slane %v194_v45, 4  ;;  %v254_v23 = vrot.slane %v253_v46, 4  ;;  %v130_v3 = vrot.slane %v129_v22, 1 }
  0xc9   :  { %v196_v48 = vadd.f32 %v195_v47, %v194_v45  ;;  %v255_v0 = vadd.f32 %v254_v23, %v253_v46  ;;  %v131_v49 = vadd.f32 %v130_v3, %v129_v22 }
  0xcb   :  { %v197_v50 = vrot.slane %v196_v48, 2  ;;  %v256_v51 = vrot.slane %v255_v0, 2  ;;  %308 = vpush %v131_v49 }
  0xcd   :  { %v198_v52 = vadd.f32 %v197_v50, %v196_v48  ;;  %v257_v1 = vadd.f32 %v256_v51, %v255_v0 }
  0xcf   :  { %v199_v53 = vrot.slane %v198_v52, 1  ;;  %v258_v55 = vrot.slane %v257_v1, 1 }
  0xd1   :  { %v200_v56 = vadd.f32 %v199_v53, %v198_v52  ;;  %v259_v57 = vadd.f32 %v258_v55, %v257_v1 }
  0xd3   :  { %310 = vpush %v200_v56 }
  0xd4   :  { %312 = vpush %v259_v57 }
  0xea   :  { %s305_s0 = spop %304 }
  0xeb   :  { %264 = sst [smem:[#allocation5]] %s305_s0 }
  0xf2   :  { %s307_s13 = spop %306 }
  0xf3   :  { %280 = sst [smem:[#allocation5 + $0x4]] %s307_s13 }
  0xfc   :  { %s309_s14 = spop %308 }
  0xfd   :  { %268 = sst [smem:[#allocation5 + $0x1]] %s309_s14 }
 0x104   :  { %s311_s18 = spop %310 }
 0x105   :  { %s313_s19 = spop %312  ;;  %272 = sst [smem:[#allocation5 + $0x2]] %s311_s18 }
 0x106   :  { %276 = sst [smem:[#allocation5 + $0x3]] %s313_s19 }
 0x107   :  { %289 = dma.smem_to_hbm %s376_s20, 16, %s287_s17, [#allocation4]  }
 0x108   :  { %370 = dma.done.wait [#allocation4], 16  }
 0x109   :  { %371 = vsyncadd [#allocation4], 4294967280 }
 0x10a   :  { %294 = sfence }
 0x10b   :  { %295 = vsyncpa [#allocation3], 1 }
 0x10c   :  { %296 = vsyncpa [#allocation4], 1 }

</bundles_post_ra>
